<compile_context>
chip_gen: v6e
topology: v6e:2x2x1
jax: 0.10.0
libtpu: 0.0.40
codegen_flags: <defaults>
</compile_context>

<pallas_src>
import jax
import jax.numpy as jnp
from jax.experimental import pallas as pl
from jax.experimental.pallas import tpu as pltpu


def _mlp_kernel(xT_ref, w1T_ref, b1_ref, w2T_ref, b2_ref, oT_ref):
    # Feature-major fused MLP: everything lane-dense along the batch axis.
    xT = xT_ref[...]                                                  # (obs, TB)
    h = jnp.dot(w1T_ref[...], xT, preferred_element_type=jnp.float32)  # (hid, TB)
    h = jnp.maximum(h + b1_ref[...], 0.0)                              # f32 bias + ReLU
    y = jnp.dot(w2T_ref[...], h.astype(w2T_ref.dtype),
                preferred_element_type=jnp.float32)                    # (act, TB)
    oT_ref[...] = (y + b2_ref[...]).astype(oT_ref.dtype)


def _round_up(n, m):
    return ((n + m - 1) // m) * m


def net_forward(x, w1, b1, w2, b2, *, tile_b=16384, compute_dtype=None):
    """x: (B, ...) -> flattened to (B, obs), like x.view(x.size(0), -1).

    w1: (obs, hidden), w2: (hidden, n_actions)  (transpose of PyTorch Linear),
    b1: (hidden,), b2: (n_actions,).
    compute_dtype: optionally cast x/W to e.g. jnp.bfloat16 (halves HBM reads
    on v6e/v7x); accumulation stays f32 either way.
    """
    batch = x.shape[0]
    x2d = x.reshape(batch, -1)                    # flatten only
    if compute_dtype is not None:
        x2d = x2d.astype(compute_dtype)
        w1 = w1.astype(compute_dtype)
        w2 = w2.astype(compute_dtype)

    obs = x2d.shape[1]
    hidden = w1.shape[1]
    n_actions = w2.shape[1]
    assert w1.shape == (obs, hidden)
    assert w2.shape == (hidden, n_actions)

    # Feature-major operands (wrapper-side layout plumbing, one-time ops).
    xT = x2d.T                                    # (obs, B)       -- lane axis = batch
    w1T = w1.T                                    # (hidden, obs)
    w2T = w2.T                                    # (n_actions, hidden)
    b1c = b1.astype(jnp.float32).reshape(hidden, 1)      # f32 columns: no in-kernel casts
    b2c = b2.astype(jnp.float32).reshape(n_actions, 1)

    LANE = 128
    if batch <= 2 * LANE:
        # Tiny batch: single tile, block dims == full array dims (layout rule OK).
        tb, grid_b, padded_b = batch, 1, batch
    else:
        # >= 2 grid steps (v7x megacore), lane-aligned tiles, capped at tile_b.
        tb = min(tile_b, _round_up(pl.cdiv(batch, 2), LANE))
        grid_b = pl.cdiv(batch, tb)
        padded_b = grid_b * tb
    if padded_b != batch:
        xT = jnp.pad(xT, ((0, 0), (0, padded_b - batch)))

    out_dtype = x2d.dtype
    act_bytes = jnp.dtype(out_dtype).itemsize
    w_bytes = jnp.dtype(w1T.dtype).itemsize
    cost = pl.CostEstimate(
        flops=2 * padded_b * (obs * hidden + hidden * n_actions),
        transcendentals=0,
        bytes_accessed=(padded_b * (obs + n_actions)) * act_bytes
                       + (obs * hidden + hidden * n_actions) * w_bytes
                       + (hidden + n_actions) * 4,
    )

    outT = pl.pallas_call(
        _mlp_kernel,
        out_shape=jax.ShapeDtypeStruct((n_actions, padded_b), out_dtype),
        grid=(grid_b,),
        in_specs=[
            # activations: tiled along the lane (batch) axis, pipelined
            pl.BlockSpec((obs, tb), lambda i: (0, i)),
            # weights / biases: full-array blocks, VMEM-resident across steps
            pl.BlockSpec((hidden, obs), lambda i: (0, 0)),
            pl.BlockSpec((hidden, 1), lambda i: (0, 0)),
            pl.BlockSpec((n_actions, hidden), lambda i: (0, 0)),
            pl.BlockSpec((n_actions, 1), lambda i: (0, 0)),
        ],
        out_specs=pl.BlockSpec((n_actions, tb), lambda i: (0, i)),
        compiler_params=pltpu.CompilerParams(
            dimension_semantics=("parallel",),    # megacore sharding on v7x
        ),
        cost_estimate=cost,
    )(xT, w1T, b1c, w2T, b2c)

    out = outT.T                                  # back to (padded_b, n_actions)
    if padded_b != batch:
        out = out[:batch]
    return out


def init_params(key, obs_size, hidden_size, n_actions, dtype=jnp.float32):
    """Deterministic synthetic parameters (PyTorch-like uniform fan-in init)."""
    k1, k2, k3, k4 = jax.random.split(key, 4)
    lim1 = 1.0 / jnp.sqrt(obs_size)
    lim2 = 1.0 / jnp.sqrt(hidden_size)
    w1 = jax.random.uniform(k1, (obs_size, hidden_size), jnp.float32, -lim1, lim1)
    b1 = jax.random.uniform(k2, (hidden_size,), jnp.float32, -lim1, lim1)
    w2 = jax.random.uniform(k3, (hidden_size, n_actions), jnp.float32, -lim2, lim2)
    b2 = jax.random.uniform(k4, (n_actions,), jnp.float32, -lim2, lim2)
    return (w1.astype(dtype), b1.astype(dtype),
            w2.astype(dtype), b2.astype(dtype))


if __name__ == "__main__":
    key = jax.random.PRNGKey(0)
    obs_size, hidden_size, n_actions = 16, 32, 4
    kx, kp = jax.random.split(key)
    w1, b1, w2, b2 = init_params(kp, obs_size, hidden_size, n_actions)

    # --- small demo batch (single-tile path) ---
    batch = 2
    x = jax.random.normal(kx, (batch, obs_size), jnp.float32)
    out = jax.block_until_ready(net_forward(x, w1, b1, w2, b2))
    ref = jnp.maximum(x @ w1 + b1, 0.0) @ w2 + b2
    assert out.shape == (batch, n_actions)
    assert jnp.allclose(out, ref, atol=1e-5, rtol=1e-5)

    # --- exercise the multi-tile / padded / megacore path too ---
    batch2 = 400
    x2 = jax.random.normal(kx, (batch2, obs_size), jnp.float32)
    out2 = jax.block_until_ready(net_forward(x2, w1, b1, w2, b2))
    ref2 = jnp.maximum(x2 @ w1 + b1, 0.0) @ w2 + b2
    assert out2.shape == (batch2, n_actions)
    assert jnp.allclose(out2, ref2, atol=1e-5, rtol=1e-5)

    print("KERNEL_OK")
</pallas_src>

<mosaic_0001>
module attributes {stable_mosaic.version = 11 : i64} {
  func.func @_mlp_kernel(%arg0: i32, %arg1: memref<16x2xf32, #tpu.memory_space<vmem>>, %arg2: memref<32x16xf32, #tpu.memory_space<vmem>>, %arg3: memref<32x1xf32, #tpu.memory_space<vmem>>, %arg4: memref<4x32xf32, #tpu.memory_space<vmem>>, %arg5: memref<4x1xf32, #tpu.memory_space<vmem>>, %arg6: memref<4x2xf32, #tpu.memory_space<vmem>>) attributes {dimension_semantics = [#tpu.dimension_semantics<parallel>], iteration_bounds = array<i64: 1>, scalar_prefetch = 0 : i64, scratch_operands = 0 : i64, tpu.core_type = #tpu.core_type<tc>, window_params = [{transform_indices = @transform_0, window_bounds = array<i64: 16, 2>}, {pipeline_mode = #tpu.pipeline_mode<synchronous>, transform_indices = @transform_1, window_bounds = array<i64: 32, 16>}, {pipeline_mode = #tpu.pipeline_mode<synchronous>, transform_indices = @transform_2, window_bounds = array<i64: 32, 1>}, {pipeline_mode = #tpu.pipeline_mode<synchronous>, transform_indices = @transform_3, window_bounds = array<i64: 4, 32>}, {pipeline_mode = #tpu.pipeline_mode<synchronous>, transform_indices = @transform_4, window_bounds = array<i64: 4, 1>}, {transform_indices = @transform_5, window_bounds = array<i64: 4, 2>}]} {
    %c0 = arith.constant 0 : index
    %c0_0 = arith.constant 0 : index
    %0 = vector.load %arg1[%c0, %c0_0] : memref<16x2xf32, #tpu.memory_space<vmem>>, vector<16x2xf32>
    %c0_1 = arith.constant 0 : index
    %c0_2 = arith.constant 0 : index
    %1 = vector.load %arg2[%c0_1, %c0_2] : memref<32x16xf32, #tpu.memory_space<vmem>>, vector<32x16xf32>
    %cst = arith.constant dense<0.000000e+00> : vector<32x2xf32>
    %2 = tpu.matmul %1, %0, %cst {dimension_numbers = #tpu.dot_dimension_numbers<[1], [0], [0], [1], [0, 0, 1, 1], [], []>} : vector<32x16xf32>, vector<16x2xf32>, vector<32x2xf32> -> vector<32x2xf32>
    %c0_3 = arith.constant 0 : index
    %c0_4 = arith.constant 0 : index
    %3 = vector.load %arg3[%c0_3, %c0_4] : memref<32x1xf32, #tpu.memory_space<vmem>>, vector<32x1xf32>
    %4 = vector.broadcast %3 : vector<32x1xf32> to vector<32x2xf32>
    %5 = arith.addf %2, %4 : vector<32x2xf32>
    %cst_5 = arith.constant 0.000000e+00 : f32
    %6 = vector.broadcast %cst_5 : f32 to vector<32x2xf32>
    %7 = arith.maximumf %5, %6 : vector<32x2xf32>
    %c0_6 = arith.constant 0 : index
    %c0_7 = arith.constant 0 : index
    %8 = vector.load %arg4[%c0_6, %c0_7] : memref<4x32xf32, #tpu.memory_space<vmem>>, vector<4x32xf32>
    %cst_8 = arith.constant dense<0.000000e+00> : vector<4x2xf32>
    %9 = tpu.matmul %8, %7, %cst_8 {dimension_numbers = #tpu.dot_dimension_numbers<[1], [0], [0], [1], [0, 0, 1, 1], [], []>} : vector<4x32xf32>, vector<32x2xf32>, vector<4x2xf32> -> vector<4x2xf32>
    %c0_9 = arith.constant 0 : index
    %c0_10 = arith.constant 0 : index
    %10 = vector.load %arg5[%c0_9, %c0_10] : memref<4x1xf32, #tpu.memory_space<vmem>>, vector<4x1xf32>
    %11 = vector.broadcast %10 : vector<4x1xf32> to vector<4x2xf32>
    %12 = arith.addf %9, %11 : vector<4x2xf32>
    %c0_11 = arith.constant 0 : index
    %c0_12 = arith.constant 0 : index
    %13 = vector.load %arg6[%c0_11, %c0_12] : memref<4x2xf32, #tpu.memory_space<vmem>>, vector<4x2xf32>
    tpu.vector_store %arg6[%c0_11, %c0_12], %12 {strides = array<i32>} : memref<4x2xf32, #tpu.memory_space<vmem>>, vector<4x2xf32>,
    return
  }
  func.func @transform_0(%arg0: i32) -> (i32, i32) {
    %c0_i32 = arith.constant 0 : i32
    %c0_i32_0 = arith.constant 0 : i32
    return %c0_i32, %arg0 : i32, i32
  }
  func.func @transform_1(%arg0: i32) -> (i32, i32) {
    %c0_i32 = arith.constant 0 : i32
    %c0_i32_0 = arith.constant 0 : i32
    %c0_i32_1 = arith.constant 0 : i32
    return %c0_i32, %c0_i32_0 : i32, i32
  }
  func.func @transform_2(%arg0: i32) -> (i32, i32) {
    %c0_i32 = arith.constant 0 : i32
    %c0_i32_0 = arith.constant 0 : i32
    %c0_i32_1 = arith.constant 0 : i32
    return %c0_i32, %c0_i32_0 : i32, i32
  }
  func.func @transform_3(%arg0: i32) -> (i32, i32) {
    %c0_i32 = arith.constant 0 : i32
    %c0_i32_0 = arith.constant 0 : i32
    %c0_i32_1 = arith.constant 0 : i32
    return %c0_i32, %c0_i32_0 : i32, i32
  }
  func.func @transform_4(%arg0: i32) -> (i32, i32) {
    %c0_i32 = arith.constant 0 : i32
    %c0_i32_0 = arith.constant 0 : i32
    %c0_i32_1 = arith.constant 0 : i32
    return %c0_i32, %c0_i32_0 : i32, i32
  }
  func.func @transform_5(%arg0: i32) -> (i32, i32) {
    %c0_i32 = arith.constant 0 : i32
    %c0_i32_0 = arith.constant 0 : i32
    return %c0_i32, %arg0 : i32, i32
  }
}

</mosaic_0001>

<bundles_post_ra>
// kernel: tpu_custom_call.1
= control target key start
LH: loop header
LB: loop body
LE: loop exit
PB: predicated region body
PF: predicated region fallthrough
CT: control target
= control target key end

     0   :  { %vm50_vm0 = vcmask 130048   ;;  %v281_v3 = vmov 0   ;;  %v282_v12 = vmov 0.0   ;;  %vm283_vm1 = vmmov 0   ;;  %s357_s0 = inlined_call_operand.vmem [shape: f32[16,2], index: 0, kind: input, shape index: {}]   ;;  %s358_s1 = inlined_call_operand.vmem [shape: f32[32,16], index: 1, kind: input, shape index: {}]   ;;  %s359_s2 = inlined_call_operand.vmem [shape: f32[32,1], index: 2, kind: input, shape index: {}]   ;;  %s360_s4 = inlined_call_operand.vmem [shape: f32[4,1], index: 4, kind: input, shape index: {}]   ;;  %s361_s3 = inlined_call_operand.vmem [shape: f32[4,32], index: 3, kind: input, shape index: {}]   ;;  %s362_s5 = inlined_call_operand.vmem [shape: f32[4,2], index: 5, kind: output, shape index: {}]  }
   0x1   :  { %v21_v0 = vld [vmem:[%s357_s0 + $0x8] sm:$0xff]  ;;  %v20_v1 = vld [vmem:[%s357_s0] sm:$0xff]  ;;  %279 = vset.pattern.permute.xlu0 %v281_v3  ;;  %280 = vset.pattern.permute.xlu1 %v281_v3  ;;  %v29_v5 = vld [vmem:[%s359_s2 + $0x18] sm:$0xff]  ;;  %vm159_vm2 = vcmask 261120   ;;  %vm233_vm3 = vcmask 11264  }
   0x2   :  { %v22_v2 = vld [vmem:[%s358_s1] sm:$0xff]  ;;  %255 = vmatprep.subr.mxu0 %v21_v0  ;;  %v23_v4 = vld [vmem:[%s358_s1 + $0x8] sm:$0xff]  ;;  %v24_v7 = vld [vmem:[%s358_s1 + $0x10] sm:$0xff]  ;;  %47 = vperm.xlu0 %279, %v29_v5  }
   0x3   :  { %259 = vmatprep.mubr.msk.f32.mxu0 %vm50_vm0, %v22_v2  ;;  %256 = vmatpush3.msra.mxu0 %v21_v0  ;;  %v27_v6 = vld [vmem:[%s359_s2 + $0x8] sm:$0xff]  ;;  %v28_v8 = vld [vmem:[%s359_s2 + $0x10] sm:$0xff]  ;;  %v26_v9 = vld [vmem:[%s359_s2] sm:$0xff] }
   0x4   :  { %257 = vmatprep.subr.mxu0 %v20_v1  ;;  %37 = vperm.xlu1 %280, %v27_v6   ;;  %v25_v10 = vld [vmem:[%s358_s1 + $0x18] sm:$0xff]  ;;  %v153_v11 = vld [vmem:[%s360_s4] sm:$0xf] }
   0x5   :  { %258 = vmatpush3.msra.mxu0 %v20_v1  ;;  %265 = vmatprep.subr.mxu1 %v282_v12  ;;  %v152_v29 = vld [vmem:[%s361_s3] sm:$0xf] }
   0x6   :  { %260 = vmatmul.mubr.msk.f32.vlgmr.msra.gmra.mxu0 %vm50_vm0, %v23_v4  ;;  %42 = vperm.xlu0 %279, %v28_v8  }
   0x7   :  { %262 = vmatprep.mubr.msk.f32.mxu0 %vm50_vm0, %v24_v7  ;;  %273 = vmatprep.mubr.msk.f32.mxu1 %vm283_vm1, %v282_v12 }
   0x8   :  { %32 = vperm.xlu1 %280, %v26_v9  }
   0xa   :  { %263 = vmatmul.mubr.msk.f32.gmra.mxu0 %vm50_vm0, %v25_v10  ;;  %156 = vperm.xlu0 %279, %v153_v11  }
  0x7d   :  { %v48_v13 = vpop.permute.xlu0 %47 }
  0x7f   :  { %v38_v14 = vpop.permute.xlu1 %37 }
  0x81   :  { %v43_v18 = vpop.permute.xlu0 %42 }
  0x83   :  { %v33_v20 = vpop.permute.xlu1 %32 }
  0x85   :  { %v157_v30 = vpop.permute.xlu0 %156 }
  0xc6   :  { %v261_v15 = vpop.f32.mrf.mxu0 }
  0xc7   :  { %v135_v22 = vadd.f32 %v261_v15, %v38_v14 }
  0xc8   :  { %v129_v16 = vpop.f32.mrf.mxu0 }
  0xc9   :  { %v130_v25 = vadd.f32 %v129_v16, %v33_v20  ;;  %v149_v27 = vmax.f32 %v135_v22, 0.0 }
  0xca   :  { %v264_v17 = vpop.f32.mrf.mxu0 }
  0xcb   :  { %v145_v19 = vadd.f32 %v264_v17, %v48_v13  ;;  %v148_v28 = vmax.f32 %v130_v25, 0.0 }
  0xcc   :  { %v139_v21 = vpop.f32.mrf.mxu0 }
  0xcd   :  { %v151_v23 = vmax.f32 %v145_v19, 0.0  ;;  %v140_v24 = vadd.f32 %v139_v21, %v43_v18 }
  0xcf   :  { %v150_v26 = vmax.f32 %v140_v24, 0.0  ;;  %266 = vmatpush3.msra.mxu1 %v151_v23 }
  0xd0   :  { %267 = vmatprep.subr.mxu1 %v282_v12 }
  0xd1   :  { %268 = vmatpush3.msra.mxu1 %v150_v26 }
  0xd2   :  { %269 = vmatprep.subr.mxu1 %v282_v12 }
  0xd3   :  { %270 = vmatpush3.msra.mxu1 %v149_v27 }
  0xd4   :  { %271 = vmatprep.subr.mxu1 %v282_v12 }
  0xd5   :  { %272 = vmatpush3.msra.mxu1 %v148_v28 }
  0xd6   :  { %274 = vmatmul.mubr.msk.f32.vlgmr.msra.gmra.mxu1 %vm159_vm2, %v152_v29 }
 0x196   :  { %v229_v31 = vpop.f32.mrf.mxu1 }
 0x197   :  { %v230_v32 = vadd.f32 %v229_v31, %v157_v30 }
 0x198   :  { %v275_v33 = vpop.f32.mrf.mxu1 }
 0x199   :  { %234 = vst.msk [vmem:[%s362_s5] sm:$0xf] %vm233_vm3, %v230_v32 }

</bundles_post_ra>
